<compile_context>
chip_gen: v7x
topology: tpu7x:2x2x1
jax: 0.10.0
libtpu: 0.0.40
codegen_flags: <defaults>
</compile_context>

<pallas_src>
import functools

import jax
import jax.numpy as jnp
from jax.experimental import pallas as pl
from jax.experimental.pallas import tpu as pltpu


def _round_up(x, m):
    return ((x + m - 1) // m) * m


def _pad2d(a, rows, cols):
    pr, pc = rows - a.shape[0], cols - a.shape[1]
    if pr == 0 and pc == 0:
        return a
    return jnp.pad(a, ((0, pr), (0, pc)))


def _vmem_capacity_bytes():
    """Physical VMEM per TensorCore; conservative (v7x) fallback if unknown."""
    try:
        cap = int(getattr(pltpu.get_tpu_info(), "vmem_capacity_bytes", 0) or 0)
        if cap > 0:
            return cap
    except Exception:
        pass
    return 64 << 20


def _num_tensorcores():
    """Best-effort TC-per-chip count (2 on v7x). Defaults to 1 if unknown."""
    try:
        info = pltpu.get_tpu_info()
        for attr in ("num_cores", "core_count", "num_tensorcores"):
            v = getattr(info, attr, None)
            if v:
                return int(v)
    except Exception:
        pass
    try:
        return int(getattr(jax.devices()[0], "num_cores", 1) or 1)
    except Exception:
        return 1


# ----------------------------- kernels --------------------------------------


def _dense_relu_kernel_out_acc(x_ref, w_ref, b_ref, o_ref):
    """f32 output: accumulate matmul partials directly into the (revisited)
    output block; bias + ReLU applied in place on the last K step."""
    k = pl.program_id(2)

    @pl.when(k == 0)
    def _():
        o_ref[...] = jnp.zeros_like(o_ref)

    # x: (tb, tk), w: (tk, tn) -- weight already transposed in the wrapper, so
    # this is a plain NN matmul on the MXU with f32 accumulation.
    o_ref[...] += jnp.dot(x_ref[...], w_ref[...],
                          preferred_element_type=jnp.float32)

    @pl.when(k == pl.num_programs(2) - 1)
    def _():
        o_ref[...] = jnp.maximum(o_ref[...] + b_ref[...], 0.0)


def _dense_relu_kernel_scratch_acc(x_ref, w_ref, b_ref, o_ref, acc_ref):
    """Non-f32 output: f32 scratch accumulator, cast once in the epilogue."""
    k = pl.program_id(2)

    @pl.when(k == 0)
    def _():
        acc_ref[...] = jnp.zeros_like(acc_ref)

    acc_ref[...] += jnp.dot(x_ref[...], w_ref[...],
                            preferred_element_type=jnp.float32)

    @pl.when(k == pl.num_programs(2) - 1)
    def _():
        o_ref[...] = jnp.maximum(acc_ref[...] + b_ref[...], 0.0).astype(o_ref.dtype)


# ----------------------------- wrapper ---------------------------------------


def dense_layer(x, weight, bias, *, tile_b=1024, tile_n=1024, tile_k=2048,
                compute_dtype=jnp.bfloat16):
    """Pallas equivalent of DenseLayer(n_in, n_out, batch_norm=False).forward.

    x:      (B, n_in)
    weight: (n_out, n_in)  (PyTorch nn.Linear convention)
    bias:   (n_out,)
    returns ReLU(x @ weight.T + bias), shape (B, n_out), in x.dtype.

    compute_dtype: dtype fed to the MXU (default bf16; accumulation is always
    f32). Pass None to keep exact f32 operands.
    """
    B, n_in = x.shape
    n_out, n_in_w = weight.shape
    assert n_in_w == n_in and bias.shape == (n_out,)

    out_dtype = x.dtype
    mxu_dtype = jnp.dtype(compute_dtype) if compute_dtype is not None else jnp.dtype(x.dtype)
    in_item = mxu_dtype.itemsize
    out_item = jnp.dtype(out_dtype).itemsize
    acc_in_out = jnp.dtype(out_dtype) == jnp.float32   # accumulate directly in o_ref

    vmem_cap = _vmem_capacity_bytes()
    num_cores = _num_tensorcores()

    # --- tile selection: lane-dense N/K (mult of 128), sublane-aligned B ---
    tb = min(_round_up(B, 8), tile_b)
    tn = min(_round_up(n_out, 128), tile_n)
    tk = min(_round_up(n_in, 128), tile_k)

    # 2-TensorCore chips (v7x): make sure the parallel grid has >= 2 blocks.
    if num_cores >= 2 and pl.cdiv(B, tb) * pl.cdiv(n_out, tn) == 1:
        if B > 8:
            tb = _round_up(pl.cdiv(B, 2), 8)
        elif n_out > 128:
            tn = _round_up(pl.cdiv(n_out, 2), 128)

    # Keep the double-buffered tile footprint within ~half of physical VMEM
    # (the remainder is pipeline / compiler headroom).
    def footprint(tb_, tn_, tk_):
        return (2 * tb_ * tk_ * in_item                 # x tiles (double buffered)
                + 2 * tk_ * tn_ * in_item               # weight tiles
                + 2 * tn_ * 4                           # bias tiles (f32)
                + 2 * tb_ * tn_ * out_item              # output tiles
                + (0 if acc_in_out else tb_ * tn_ * 4)) # f32 scratch accumulator

    budget = vmem_cap // 2
    while footprint(tb, tn, tk) > budget and tk > 128:
        tk = max(128, _round_up(tk // 2, 128))
    while footprint(tb, tn, tk) > budget and tn > 128:
        tn = max(128, _round_up(tn // 2, 128))
    while footprint(tb, tn, tk) > budget and tb > 8:
        tb = max(8, _round_up(tb // 2, 8))

    Bp, Np, Kp = _round_up(B, tb), _round_up(n_out, tn), _round_up(n_in, tk)
    grid = (Bp // tb, Np // tn, Kp // tk)
    gb, gn, gk = grid

    # --- wrapper-side (one-time) cast / transpose / zero-pad ---
    # Zero padding is exact for GEMM + bias + ReLU. NOTE: for weights reused
    # across many calls, hoist wtp/bp construction out of the per-call path.
    xp = _pad2d(x.astype(mxu_dtype), Bp, Kp)                       # (Bp, Kp)
    wtp = _pad2d(weight.T.astype(mxu_dtype), Kp, Np)               # (Kp, Np)
    bp = _pad2d(bias.astype(jnp.float32).reshape(1, n_out), 1, Np)  # (1, Np)

    fp = footprint(tb, tn, tk)
    # Never request the whole physical VMEM (v7x has only 64 MiB per TC).
    vmem_limit = int(min(vmem_cap - (16 << 20),
                         max(fp + (8 << 20), 32 << 20)))
    vmem_limit = max(vmem_limit, fp + (2 << 20))

    cost = pl.CostEstimate(
        flops=2 * B * n_in * n_out,
        transcendentals=0,
        bytes_accessed=int(Bp * Kp * in_item * gn       # x streamed once per N block
                           + Kp * Np * in_item * gb     # weight once per B block
                           + Np * 4
                           + Bp * Np * out_item),
    )

    if acc_in_out:
        kernel = _dense_relu_kernel_out_acc
        scratch_shapes = []
    else:
        kernel = _dense_relu_kernel_scratch_acc
        scratch_shapes = [pltpu.VMEM((tb, tn), jnp.float32)]

    out_padded = pl.pallas_call(
        kernel,
        out_shape=jax.ShapeDtypeStruct((Bp, Np), out_dtype),
        grid_spec=pltpu.PrefetchScalarGridSpec(
            num_scalar_prefetch=0,
            grid=grid,
            in_specs=[
                pl.BlockSpec((tb, tk), lambda i, j, k: (i, k)),    # x
                pl.BlockSpec((tk, tn), lambda i, j, k: (k, j)),    # weight^T
                pl.BlockSpec((1, tn), lambda i, j, k: (0, j)),     # bias
            ],
            out_specs=pl.BlockSpec((tb, tn), lambda i, j, k: (i, j)),
            scratch_shapes=scratch_shapes,
        ),
        compiler_params=pltpu.CompilerParams(
            dimension_semantics=("parallel", "parallel", "arbitrary"),
            vmem_limit_bytes=vmem_limit,
        ),
        cost_estimate=cost,
    )(xp, wtp, bp)

    if Bp == B and Np == n_out:
        return out_padded
    return out_padded[:B, :n_out]


# TODO(synk): optional BatchNorm1d branch (batch_norm=True) not implemented;
# the module's default config (batch_norm=False) is reproduced exactly.


if __name__ == "__main__":
    key = jax.random.PRNGKey(0)
    kx, kw, kb = jax.random.split(key, 3)

    B, n_in, n_out = 8, 32, 64
    x = jax.random.normal(kx, (B, n_in), dtype=jnp.float32)
    # Deterministic init mimicking nn.Linear's uniform(-1/sqrt(n_in), 1/sqrt(n_in))
    bound = 1.0 / jnp.sqrt(jnp.float32(n_in))
    weight = jax.random.uniform(kw, (n_out, n_in), minval=-bound, maxval=bound,
                                dtype=jnp.float32)
    bias = jax.random.uniform(kb, (n_out,), minval=-bound, maxval=bound,
                              dtype=jnp.float32)

    # Reference in plain JAX (same math as torch: relu(x @ W.T + b))
    ref = jnp.maximum(x @ weight.T + bias, 0.0)

    # Default fast path: bf16 MXU operands, f32 accumulation.
    out_bf16 = jax.block_until_ready(dense_layer(x, weight, bias))
    assert out_bf16.shape == (B, n_out)
    assert out_bf16.dtype == x.dtype
    assert jnp.allclose(out_bf16, ref, atol=5e-2, rtol=5e-2)

    # Exact f32 path (accumulates directly into the output block).
    out_f32 = jax.block_until_ready(dense_layer(x, weight, bias,
                                                compute_dtype=None))
    assert out_f32.shape == (B, n_out)
    assert jnp.allclose(out_f32, ref, atol=1e-5, rtol=1e-5)

    print("KERNEL_OK")
</pallas_src>

<mosaic_0001>
module attributes {stable_mosaic.version = 11 : i64} {
  func.func @_dense_relu_kernel_out_acc(%arg0: i32, %arg1: i32, %arg2: i32, %arg3: memref<8x128xbf16, #tpu.memory_space<vmem>>, %arg4: memref<128x128xbf16, #tpu.memory_space<vmem>>, %arg5: memref<1x128xf32, #tpu.memory_space<vmem>>, %arg6: memref<8x128xf32, #tpu.memory_space<vmem>>) attributes {dimension_semantics = [#tpu.dimension_semantics<parallel>, #tpu.dimension_semantics<parallel>, #tpu.dimension_semantics<arbitrary>], iteration_bounds = array<i64: 1, 1, 1>, scalar_prefetch = 0 : i64, scratch_operands = 0 : i64, tpu.core_type = #tpu.core_type<tc>, window_params = [{transform_indices = @transform_0, window_bounds = array<i64: 8, 128>}, {transform_indices = @transform_1, window_bounds = array<i64: 128, 128>}, {transform_indices = @transform_2, window_bounds = array<i64: 1, 128>}, {transform_indices = @transform_3, window_bounds = array<i64: 8, 128>}]} {
    %c0_i32 = arith.constant 0 : i32
    %0 = arith.cmpi eq, %arg2, %c0_i32 : i32
    %1 = arith.extui %0 : i1 to i32
    %c0_i32_0 = arith.constant 0 : i32
    %2 = arith.cmpi ne, %1, %c0_i32_0 : i32
    scf.if %2 {
      %cst_10 = arith.constant 0.000000e+00 : f32
      %12 = vector.broadcast %cst_10 : f32 to vector<8x128xf32>
      %c0_11 = arith.constant 0 : index
      %c0_12 = arith.constant 0 : index
      %13 = vector.load %arg6[%c0_11, %c0_12] : memref<8x128xf32, #tpu.memory_space<vmem>>, vector<8x128xf32>
      tpu.vector_store %arg6[%c0_11, %c0_12], %12 {strides = array<i32>} : memref<8x128xf32, #tpu.memory_space<vmem>>, vector<8x128xf32>,
    } else {
    }
    %c0 = arith.constant 0 : index
    %c0_1 = arith.constant 0 : index
    %3 = vector.load %arg6[%c0, %c0_1] : memref<8x128xf32, #tpu.memory_space<vmem>>, vector<8x128xf32>
    %c0_2 = arith.constant 0 : index
    %c0_3 = arith.constant 0 : index
    %4 = vector.load %arg3[%c0_2, %c0_3] : memref<8x128xbf16, #tpu.memory_space<vmem>>, vector<8x128xbf16>
    %c0_4 = arith.constant 0 : index
    %c0_5 = arith.constant 0 : index
    %5 = vector.load %arg4[%c0_4, %c0_5] : memref<128x128xbf16, #tpu.memory_space<vmem>>, vector<128x128xbf16>
    %cst = arith.constant dense<0.000000e+00> : vector<8x128xf32>
    %6 = tpu.matmul %4, %5, %cst {dimension_numbers = #tpu.dot_dimension_numbers<[1], [0], [0], [1], [0, 0, 1, 1], [], []>} : vector<8x128xbf16>, vector<128x128xbf16>, vector<8x128xf32> -> vector<8x128xf32>
    %7 = arith.addf %3, %6 : vector<8x128xf32>
    %c0_6 = arith.constant 0 : index
    %c0_7 = arith.constant 0 : index
    %8 = vector.load %arg6[%c0_6, %c0_7] : memref<8x128xf32, #tpu.memory_space<vmem>>, vector<8x128xf32>
    tpu.vector_store %arg6[%c0_6, %c0_7], %7 {strides = array<i32>} : memref<8x128xf32, #tpu.memory_space<vmem>>, vector<8x128xf32>,
    %c0_i32_8 = arith.constant 0 : i32
    %9 = arith.cmpi eq, %arg2, %c0_i32_8 : i32
    %10 = arith.extui %9 : i1 to i32
    %c0_i32_9 = arith.constant 0 : i32
    %11 = arith.cmpi ne, %10, %c0_i32_9 : i32
    scf.if %11 {
      %c0_10 = arith.constant 0 : index
      %c0_11 = arith.constant 0 : index
      %12 = vector.load %arg6[%c0_10, %c0_11] : memref<8x128xf32, #tpu.memory_space<vmem>>, vector<8x128xf32>
      %c0_12 = arith.constant 0 : index
      %c0_13 = arith.constant 0 : index
      %13 = vector.load %arg5[%c0_12, %c0_13] : memref<1x128xf32, #tpu.memory_space<vmem>>, vector<1x128xf32>
      %14 = vector.broadcast %13 : vector<1x128xf32> to vector<8x128xf32>
      %15 = arith.addf %12, %14 : vector<8x128xf32>
      %cst_14 = arith.constant 0.000000e+00 : f32
      %16 = vector.broadcast %cst_14 : f32 to vector<8x128xf32>
      %17 = arith.maximumf %15, %16 : vector<8x128xf32>
      %c0_15 = arith.constant 0 : index
      %c0_16 = arith.constant 0 : index
      %18 = vector.load %arg6[%c0_15, %c0_16] : memref<8x128xf32, #tpu.memory_space<vmem>>, vector<8x128xf32>
      tpu.vector_store %arg6[%c0_15, %c0_16], %17 {strides = array<i32>} : memref<8x128xf32, #tpu.memory_space<vmem>>, vector<8x128xf32>,
    } else {
    }
    return
  }
  func.func @transform_0(%arg0: i32, %arg1: i32, %arg2: i32) -> (i32, i32) {
    %c0_i32 = arith.constant 0 : i32
    return %arg0, %arg2 : i32, i32
  }
  func.func @transform_1(%arg0: i32, %arg1: i32, %arg2: i32) -> (i32, i32) {
    %c0_i32 = arith.constant 0 : i32
    return %arg2, %arg1 : i32, i32
  }
  func.func @transform_2(%arg0: i32, %arg1: i32, %arg2: i32) -> (i32, i32) {
    %c0_i32 = arith.constant 0 : i32
    %c0_i32_0 = arith.constant 0 : i32
    return %c0_i32, %arg1 : i32, i32
  }
  func.func @transform_3(%arg0: i32, %arg1: i32, %arg2: i32) -> (i32, i32) {
    %c0_i32 = arith.constant 0 : i32
    return %arg0, %arg1 : i32, i32
  }
}

</mosaic_0001>

<bundles_post_ra>
// kernel: tpu_custom_call.1
= control target key start
LH: loop header
LB: loop body
LE: loop exit
PB: predicated region body
PF: predicated region fallthrough
CT: control target
= control target key end

     0   :  { %8 = vsyncpa [#allocation3], 0  ;;  %s383_s0 = inlined_call_operand.hbm [shape: bf16[8,128], index: 0, kind: input, shape index: {}]   ;;  %s384_s1 = inlined_call_operand.hbm [shape: bf16[128,128], index: 1, kind: input, shape index: {}]   ;;  %s385_s2 = inlined_call_operand.vmem [shape: f32[1,128], index: 2, kind: input, shape index: {}]   ;;  %s386_s3 = inlined_call_operand.hbm [shape: f32[8,128], index: 3, kind: output, shape index: {}]  }
   0x1   :  { %9 = vsyncpa [#allocation6], 0 }
   0x2   :  { %10 = vsyncpa [#allocation4], 0  ;;  %s310_s12 = smov [#allocation2]   ;;  %s311_s14 = smov [#allocation5]  }
   0x3   :  { %s17_s13 = sshll.u32 %s310_s12, 4  ;;  %s26_s15 = sshll.u32 %s311_s14, 4  ;;  %s18_s13 = int_to_ptr.vmem [resolvable:$true] %s17_s13  ;;  %s337_s15 = int_to_ptr.vmem [resolvable:$true] %s26_s15 }
   0x4   :  { %s238_s18 = scalar_lea.hbm %s383_s0, 64 }
   0x5   :  { %p239_p0 = scmp.ne.s32.totalorder %s383_s0, %s238_s18  ;;  %p242_p1 = scmp.lt.u32.totalorder %s238_s18, %s383_s0 }
   0x7   :  { %p244_p2 = pnand %p242_p1, %p239_p0 }
   0x9   :  { %247 = shalt.err (!%p244_p2)
}
   0xa   :  { %s248_s23 = scalar_lea.vmem %s18_s13, 64  ;;  %p253_p4 = scmp.lt.s32.totalorder %s18_s13, %s18_s13 }
   0xb   :  { %p249_p3 = scmp.ne.s32.totalorder %s18_s13, %s248_s23  ;;  %p254_p5 = scmp.lt.s32.totalorder %s248_s23, %s248_s23 }
   0xd   :  { %p255_p6 = por %p254_p5, %p253_p4 }
   0xf   :  { %p256_p7 = pnand %p255_p6, %p249_p3 }
  0x11   :  { %259 = shalt.err (!%p256_p7)
}
  0x12   :  { %20 = dma.hbm_to_vmem [thread:$0]  %s383_s0, 64, %s18_s13, [#allocation3]  }
  0x13   :  { %s260_s28 = scalar_lea.hbm %s384_s1, 1024 }
  0x14   :  { %p261_p8 = scmp.ne.s32.totalorder %s384_s1, %s260_s28  ;;  %p264_p9 = scmp.lt.u32.totalorder %s260_s28, %s384_s1 }
  0x16   :  { %p266_p10 = pnand %p264_p9, %p261_p8 }
  0x18   :  { %269 = shalt.err (!%p266_p10)
}
  0x19   :  { %s270_s6 = scalar_lea.vmem %s337_s15, 1024  ;;  %p275_p12 = scmp.lt.s32.totalorder %s337_s15, %s337_s15 }
  0x1a   :  { %p271_p11 = scmp.ne.s32.totalorder %s337_s15, %s270_s6  ;;  %p276_p13 = scmp.lt.s32.totalorder %s270_s6, %s270_s6 }
  0x1c   :  { %p277_p0 = por %p276_p13, %p275_p12 }
  0x1e   :  { %p278_p1 = pnand %p277_p0, %p271_p11 }
  0x20   :  { %281 = shalt.err (!%p278_p1)
}
  0x21   :  { %s312_s0 = smov 64   ;;  %s313_s7 = smov 4  }
  0x22   :  { %32 = dma.hbm_to_vmem [thread:$0]  %s384_s1, 1024, %s337_s15, [#allocation6], %s312_s0, %s312_s0, %s313_s7  }
  0x23   :  { %304 = dma.done.wait [#allocation3], 64  }
  0x24   :  { %305 = vsyncadd [#allocation3], 4294967232 }
  0x25   :  { %306 = dma.done.wait [#allocation6], 1024  }
  0x26   :  { %307 = vsyncadd [#allocation6], 4294966272  ;;  %v314_v0 = vmov 0.0   ;;  %vm315_vm0 = vmmov 0   ;;  %v230_v1 = vld [vmem:[#allocation5] sm:$0xff]   ;;  %v231_v2 = vld [vmem:[#allocation5 + $0x8] sm:$0xff]  }
  0x27   :  { %203 = vmatprep.subr.bf16.mxu0 %v314_v0  ;;  %219 = vmatprep.mubr.msk.bf16.mxu0 %vm315_vm0, %v314_v0  ;;  %v232_v3 = vld [vmem:[#allocation5 + $0x10] sm:$0xff]   ;;  %v233_v4 = vld [vmem:[#allocation5 + $0x18] sm:$0xff]   ;;  %v234_v5 = vld [vmem:[#allocation5 + $0x20] sm:$0xff]   ;;  %s316_s11 = smov [#allocation7]  }
  0x28   :  { %204 = vmatpush3.bf16.msra.mxu0 %v230_v1  ;;  %v235_v6 = vld [vmem:[#allocation5 + $0x28] sm:$0xff]   ;;  %v236_v7 = vld [vmem:[#allocation5 + $0x30] sm:$0xff]   ;;  %v237_v8 = vld [vmem:[#allocation5 + $0x38] sm:$0xff]   ;;  %s175_s12 = sshll.u32 %s316_s11, 4  ;;  %s176_s12 = int_to_ptr.vmem [resolvable:$true] %s175_s12 }
  0x29   :  { %205 = vmatprep.subr.bf16.mxu0 %v314_v0  ;;  %v48_v9 = vld [vmem:[#allocation2] sm:$0xf]  ;;  %s282_s13 = scalar_lea.vmem %s176_s12, 128  ;;  %p287_p3 = scmp.lt.s32.totalorder %s176_s12, %s176_s12 }
  0x2a   :  { %v193_v11 = vld [vmem:[%s385_s2] ss:$0 sm:$0xff]  ;;  %p283_p2 = scmp.ne.s32.totalorder %s176_s12, %s282_s13  ;;  %p288_p4 = scmp.lt.s32.totalorder %s282_s13, %s282_s13 }
  0x2c   :  { %206 = vmatpush3.bf16.msra.mxu0 %v231_v2  ;;  %p289_p5 = por %p288_p4, %p287_p3 }
  0x2d   :  { %207 = vmatprep.subr.bf16.mxu0 %v314_v0 }
  0x2e   :  { %p290_p6 = pnand %p289_p5, %p283_p2 }
  0x30   :  { %208 = vmatpush3.bf16.msra.mxu0 %v232_v3 }
  0x31   :  { %209 = vmatprep.subr.bf16.mxu0 %v314_v0 }
  0x34   :  { %210 = vmatpush3.bf16.msra.mxu0 %v233_v4 }
  0x35   :  { %211 = vmatprep.subr.bf16.mxu0 %v314_v0 }
  0x38   :  { %212 = vmatpush3.bf16.msra.mxu0 %v234_v5 }
  0x39   :  { %213 = vmatprep.subr.bf16.mxu0 %v314_v0 }
  0x3c   :  { %214 = vmatpush3.bf16.msra.mxu0 %v235_v6 }
  0x3d   :  { %215 = vmatprep.subr.bf16.mxu0 %v314_v0 }
  0x40   :  { %216 = vmatpush3.bf16.msra.mxu0 %v236_v7 }
  0x41   :  { %217 = vmatprep.subr.bf16.mxu0 %v314_v0 }
  0x44   :  { %218 = vmatpush3.bf16.msra.mxu0 %v237_v8 }
  0x47   :  { %220 = vmatmul.mubr.bf16.vlgmr.msra.gmra.mrb[0].mxu0 %v48_v9 }
 0x11a   :  { %v147_v10 = vpop.f32.mrb[0].mxu0 }
 0x11b   :  { %v221_v12 = vpop.f32.mrb[1].mxu0  ;;  %v166_v15 = vadd.f32 %v193_v11, %v147_v10 }
 0x11c   :  { %v150_v13 = vpop.f32.mrb[2].mxu0 }
 0x11d   :  { %v222_v14 = vpop.f32.mrb[3].mxu0  ;;  %v167_v16 = vmax.f32 %v166_v15, 0.0 }
 0x11f   :  { %168 = vst [vmem:[#allocation7] sm:$0xff] %v167_v16 }
 0x120   :  { %293 = shalt.err (!%p290_p6)
}
 0x121   :  { %s294_s2 = scalar_lea.hbm %s386_s3, 128 }
 0x122   :  { %p295_p7 = scmp.ne.s32.totalorder %s386_s3, %s294_s2  ;;  %p298_p8 = scmp.lt.u32.totalorder %s294_s2, %s386_s3 }
 0x124   :  { %p300_p9 = pnand %p298_p8, %p295_p7 }
 0x126   :  { %303 = shalt.err (!%p300_p9)
}
 0x127   :  { %178 = dma.vmem_to_hbm [thread:$0]  %s176_s12, 128, %s386_s3, [#allocation4]  }
 0x128   :  { %308 = dma.done.wait [#allocation4], 128  }
 0x129   :  { %309 = vsyncadd [#allocation4], 4294967168 }
 0x12a   :  { %182 = vsyncpa [#allocation3], 1 }
 0x12b   :  { %183 = vsyncpa [#allocation6], 1 }
 0x12c   :  { %184 = vsyncpa [#allocation4], 1 }

</bundles_post_ra>
